<compile_context>
chip_gen: v5e
topology: v5e:2x2
jax: 0.10.0
libtpu: 0.0.40
codegen_flags: <defaults>
</compile_context>

<pallas_src>
import functools
from math import log

import numpy as np
import jax
import jax.numpy as jnp
from jax.experimental import pallas as pl
from jax.experimental.pallas import tpu as pltpu

LATENT = 8        # latent_dim
MATCH = 16        # matching_dim
HIDDEN = 32       # hidden_size
N_DUMMY = 2       # num_dummies in AddressRecognition
LOG2PI = 1.8378770664093453

_VMEM = pl.BlockSpec(memory_space=pltpu.MemorySpace.VMEM)


# ---------------------------------------------------------------- Pallas kernels

def _addr_kernel(sx_ref, wa_ref, ba_ref, blkmask_ref, onehot_n_ref, out_ref,
                 *, batch, n_slots):
    """q(a|x,M): matching-space dot product, log-softmax over slots, KL to uniform.

    sx_ref: (B + B*N, D) rows = [x ; M_aug flattened]   (one stacked matmul -> better MXU fill)
    out_ref: (B, N+1) packed = [logq | KL_a]             (single lane-dense store)
    """
    f32 = jnp.float32
    f = jnp.dot(sx_ref[...], wa_ref[...], preferred_element_type=f32) + ba_ref[...]
    fx = f[:batch]                     # (B, MATCH)
    fm = f[batch:]                     # (B*N, MATCH)

    # logits[b, n] = fx[b] . fm[b*N + n]  -- block-diagonal selection via constant matmuls
    full = jax.lax.dot_general(fx, fm, (((1,), (1,)), ((), ())),
                               preferred_element_type=f32)        # (B, B*N)
    masked = full * blkmask_ref[...]                              # zero cross-batch terms
    logits = jnp.dot(masked, onehot_n_ref[...],
                     preferred_element_type=f32)                  # (B, N)

    m = jnp.max(logits, axis=-1, keepdims=True)
    lse = m + jnp.log(jnp.sum(jnp.exp(logits - m), axis=-1, keepdims=True))
    logq = logits - lse
    q = jnp.exp(logq)
    kla = jnp.sum(q * (logq + log(n_slots)), axis=-1, keepdims=True)   # KL(q_a || uniform)

    out_ref[...] = jnp.concatenate([logq, kla], axis=-1)               # (B, N+1)


def _main_kernel(enc_ref, eps_ref, ra_ref, kla_ref, sel_ref, onehot_iw_ref,
                 we1_ref, be1_ref, we2_ref, be2_ref,
                 wrx_ref, wrm_ref, br_ref,
                 wd1z_ref, wd1p_ref, bd1_ref,
                 wd2_ref, bd2_ref, wskip_ref,
                 stats_ref, *, batch, iw, n_slots, latent):
    """Everything after address sampling, fused.

    enc_ref:  (2*B*iw, D) rows = [x_rep ; m_a]     (shared encoder run once on the stack)
    eps_ref:  (B*iw, L)   pre-sampled N(0,1) noise
    ra_ref:   (B, iw)     rec_llh_a = gathered q_a logits
    kla_ref:  (B, 1)      KL(q_a || p_a)
    sel/onehot_iw: constant matrices to regroup per-row (B*iw,1) columns into (B,iw)
    stats_ref: (B, 4) packed = [loss | NLL | KL_z | ELBO]
    """
    f32 = jnp.float32
    BI = batch * iw

    enc_in = enc_ref[...]                                             # (2*BI, D)

    # shared 2-layer feature encoder (single stacked matmul for x_rep and m_a)
    h1 = jnp.maximum(
        jnp.dot(enc_in, we1_ref[...], preferred_element_type=f32) + be1_ref[...], 0.0)
    f_all = jnp.dot(h1, we2_ref[...], preferred_element_type=f32) + be2_ref[...]

    f_x = f_all[:BI]                                                  # (BI, 2L)
    f_m = f_all[BI:]                                                  # (BI, 2L)
    x_rep = enc_in[:BI]                                               # (BI, D)
    m_flat = enc_in[BI:]                                              # (BI, D)

    # ConditionalPrior p(z | m_a)
    p_mu = f_m[:, :latent]
    p_lv = f_m[:, latent:]

    # RecognitionModel q(z | x, m_a)  (split weights instead of lane-axis concat)
    rq = (jnp.dot(f_x, wrx_ref[...], preferred_element_type=f32)
          + jnp.dot(f_m, wrm_ref[...], preferred_element_type=f32)
          + br_ref[...])
    q_mu = rq[:, :latent]
    q_lv = rq[:, latent:]
    z = q_mu + jnp.exp(0.5 * q_lv) * eps_ref[...]                     # rsample

    # GenerativeModel decoder p(x | z, m_a) with skip connection from m_a
    h2 = jnp.maximum(
        jnp.dot(z, wd1z_ref[...], preferred_element_type=f32)
        + jnp.dot(p_mu, wd1p_ref[...], preferred_element_type=f32)
        + bd1_ref[...], 0.0)
    dl = (jnp.dot(h2, wd2_ref[...], preferred_element_type=f32)
          + bd2_ref[...]
          + jnp.dot(m_flat, wskip_ref[...], preferred_element_type=f32))  # (BI, D)

    # log-likelihood / KL reductions
    softplus = jnp.maximum(dl, 0.0) + jnp.log(1.0 + jnp.exp(-jnp.abs(dl)))
    gx = jnp.sum(x_rep * dl - softplus, axis=-1, keepdims=True)       # Bernoulli log-prob

    def normal_lp(v, mu, lv):
        return -0.5 * ((v - mu) ** 2 * jnp.exp(-lv) + lv + LOG2PI)

    gz = jnp.sum(normal_lp(z, p_mu, p_lv), axis=-1, keepdims=True)    # log p(z|m_a)
    rz = jnp.sum(normal_lp(z, q_mu, q_lv), axis=-1, keepdims=True)    # log q(z|x,m_a)
    kl = 0.5 * (p_lv - q_lv + (jnp.exp(q_lv) + (q_mu - p_mu) ** 2) * jnp.exp(-p_lv) - 1.0)
    klz = jnp.sum(kl, axis=-1, keepdims=True)                         # KL(q||p) per row

    gxz = gx + gz - rz                                                # (BI, 1)

    # regroup (BI, 1) -> (B, iw) via constant matmuls (avoids lane-axis reshape)
    sel = sel_ref[...]              # (B, BI)
    onehot = onehot_iw_ref[...]     # (BI, iw)

    def regroup(col):
        return jnp.dot(sel, col * onehot, preferred_element_type=f32)

    gx_g = regroup(gx)                                                # (B, iw)
    klz_g = regroup(klz)
    ra = ra_ref[...]
    bounds = regroup(gxz) - log(n_slots) - ra                         # ga = -log(N) uniform prior

    # logsumexp / VIMCO / history
    m_b = jnp.max(bounds, axis=-1, keepdims=True)
    lse = m_b + jnp.log(jnp.sum(jnp.exp(bounds - m_b), axis=-1, keepdims=True))
    elbo = lse - log(iw)                                              # (B, 1)
    w = jnp.exp(bounds - lse)                                         # softmax over iw
    r = jnp.clip(w, 1e-10, 1.0 - 1e-5)
    l_mi = lse + jnp.log(1.0 - r) - log(iw - 1)                       # logdiff(lse, bounds) - log(iw-1)
    l_vimco = (lse - log(iw)) - l_mi - w
    loss = -(elbo + jnp.sum(l_vimco * ra, axis=-1, keepdims=True))    # (B, 1)

    m_gx = jnp.max(gx_g, axis=-1, keepdims=True)
    nll = -(m_gx + jnp.log(jnp.sum(jnp.exp(gx_g - m_gx), axis=-1, keepdims=True)))
    klzm = jnp.mean(klz_g, axis=-1, keepdims=True)
    elbo_h = nll + klzm + kla_ref[...]

    # single packed lane-dense store
    stats_ref[...] = jnp.concatenate([loss, nll, klzm, elbo_h], axis=-1)   # (B, 4)


# ---------------------------------------------------------------- parameters

def init_params(key, data_dim, latent_dim, match_dim, hidden, n_dummy):
    ks = jax.random.split(key, 10)

    def w(k, shape, scale):
        return scale * jax.random.normal(k, shape, jnp.float32)

    def b(n):
        return jnp.zeros((1, n), jnp.float32)

    L2 = 2 * latent_dim
    return {
        "dummy": w(ks[0], (n_dummy, data_dim), 0.5),          # AddressRecognition dummies
        "Wa": w(ks[1], (data_dim, match_dim), 0.05), "ba": b(match_dim),
        "We1": w(ks[2], (data_dim, hidden), 0.05), "be1": b(hidden),
        "We2": w(ks[3], (hidden, L2), 0.05), "be2": b(L2),
        # RecognitionModel weights, pre-split (acts on [f_x, f_m])
        "Wrx": w(ks[4], (L2, L2), 0.1), "Wrm": w(ks[5], (L2, L2), 0.1), "br": b(L2),
        # Decoder first layer, pre-split (acts on [z, p_mu])
        "Wd1z": w(ks[6], (latent_dim, hidden), 0.1),
        "Wd1p": w(ks[7], (latent_dim, hidden), 0.1), "bd1": b(hidden),
        "Wd2": w(ks[8], (hidden, data_dim), 0.05), "bd2": b(data_dim),
        "Wskip": w(ks[9], (data_dim, data_dim), 0.02),
    }


# ---------------------------------------------------------------- forward pass

def vma_forward(params, M, x, key, iw):
    """VMA.forward((M, x), iw) -> (loss.mean(), history).  M: (B,T,D), x: (B,D)."""
    assert iw >= 2, "VIMCO baseline requires iw >= 2 (log(iw-1))"
    B, T, D = M.shape
    L = LATENT
    N = T + N_DUMMY
    BI = B * iw

    # add_dummy: append learned dummy memory slots
    dummies = jnp.broadcast_to(params["dummy"][None], (B, N_DUMMY, D))
    M_aug = jnp.concatenate([M, dummies], axis=1)                       # (B, N, D)

    # ---- kernel 1: address distribution q(a | x, M) ----
    sx = jnp.concatenate([x, M_aug.reshape(B * N, D)], axis=0)          # (B + B*N, D)
    c = np.arange(B * N)
    blkmask = (c[None, :] // N == np.arange(B)[:, None]).astype(np.float32)    # (B, B*N)
    onehot_n = (c[:, None] % N == np.arange(N)[None, :]).astype(np.float32)    # (B*N, N)

    addr_out = pl.pallas_call(
        functools.partial(_addr_kernel, batch=B, n_slots=N),
        out_shape=jax.ShapeDtypeStruct((B, N + 1), jnp.float32),
        in_specs=[_VMEM] * 5,
        out_specs=_VMEM,
    )(sx, params["Wa"], params["ba"], jnp.asarray(blkmask), jnp.asarray(onehot_n))

    logq = addr_out[:, :N]                                              # (B, N)
    kl_a = addr_out[:, N:]                                              # (B, 1)

    # ---- JAX glue: categorical sampling, gathers, reparameterization noise ----
    k_a, k_z = jax.random.split(key)
    a = jax.random.categorical(k_a, logq, axis=-1, shape=(iw, B)).T     # (B, iw)
    a_full = jnp.broadcast_to(a[:, :, None], (B, iw, D))
    m_flat = jnp.take_along_axis(M_aug, a_full, axis=1).reshape(BI, D)  # (BI, D)
    ra = jnp.take_along_axis(logq, a, axis=1)                           # rec_llh_a (B, iw)
    # TODO(synk): rec_llh_a.detach() in the reference only affects gradients; forward value identical.

    x_rep = jnp.broadcast_to(x[:, None, :], (B, iw, D)).reshape(BI, D)
    enc_in = jnp.concatenate([x_rep, m_flat], axis=0)                   # (2*BI, D)
    eps = jax.random.normal(k_z, (BI, L), jnp.float32)

    rr = np.arange(BI)
    sel = (rr[None, :] // iw == np.arange(B)[:, None]).astype(np.float32)        # (B, BI)
    onehot_iw = (rr[:, None] % iw == np.arange(iw)[None, :]).astype(np.float32)  # (BI, iw)

    # ---- kernel 2: fused encoder / recognition / prior / decoder / bounds / VIMCO ----
    stats = pl.pallas_call(
        functools.partial(_main_kernel, batch=B, iw=iw, n_slots=N, latent=L),
        out_shape=jax.ShapeDtypeStruct((B, 4), jnp.float32),
        in_specs=[_VMEM] * 19,
        out_specs=_VMEM,
    )(enc_in, eps, ra, kl_a, jnp.asarray(sel), jnp.asarray(onehot_iw),
      params["We1"], params["be1"], params["We2"], params["be2"],
      params["Wrx"], params["Wrm"], params["br"],
      params["Wd1z"], params["Wd1p"], params["bd1"],
      params["Wd2"], params["bd2"], params["Wskip"])

    loss = stats[:, 0]
    history = {
        "KL_a": kl_a[:, 0].mean(),
        "KL_z": stats[:, 2].mean(),
        "NLL": stats[:, 1].mean(),
        "ELBO": stats[:, 3].mean(),
    }
    return loss.mean(), history


# ---------------------------------------------------------------- main

if __name__ == "__main__":
    key = jax.random.PRNGKey(0)
    kp, kM, kx, kf = jax.random.split(key, 4)

    B, T, D = 2, 4, 128     # batch, memory slots, flattened data dim
    IW = 4                  # importance samples

    params = init_params(kp, D, LATENT, MATCH, HIDDEN, N_DUMMY)
    M = (jax.random.uniform(kM, (B, T, D)) > 0.5).astype(jnp.float32)
    x = (jax.random.uniform(kx, (B, D)) > 0.5).astype(jnp.float32)

    fwd = jax.jit(functools.partial(vma_forward, iw=IW))
    loss, history = fwd(params, M, x, kf)
    jax.block_until_ready(loss)
    jax.block_until_ready(history)

    assert jnp.isfinite(loss), "loss is not finite"
    print("KERNEL_OK")
</pallas_src>

<mosaic_0001>
module attributes {stable_mosaic.version = 11 : i64} {
  func.func @_addr_kernel(%arg0: memref<14x128xf32, #tpu.memory_space<vmem>>, %arg1: memref<128x16xf32, #tpu.memory_space<vmem>>, %arg2: memref<1x16xf32, #tpu.memory_space<vmem>>, %arg3: memref<2x12xf32, #tpu.memory_space<vmem>>, %arg4: memref<12x6xf32, #tpu.memory_space<vmem>>, %arg5: memref<2x7xf32, #tpu.memory_space<vmem>>) attributes {dimension_semantics = [], scalar_prefetch = 0 : i64, scratch_operands = 0 : i64, tpu.core_type = #tpu.core_type<tc>} {
    %c0 = arith.constant 0 : index
    %c0_0 = arith.constant 0 : index
    %0 = vector.load %arg0[%c0, %c0_0] : memref<14x128xf32, #tpu.memory_space<vmem>>, vector<14x128xf32>
    %c0_1 = arith.constant 0 : index
    %c0_2 = arith.constant 0 : index
    %1 = vector.load %arg1[%c0_1, %c0_2] : memref<128x16xf32, #tpu.memory_space<vmem>>, vector<128x16xf32>
    %cst = arith.constant dense<0.000000e+00> : vector<14x16xf32>
    %2 = tpu.matmul %0, %1, %cst {dimension_numbers = #tpu.dot_dimension_numbers<[1], [0], [0], [1], [0, 0, 1, 1], [], []>} : vector<14x128xf32>, vector<128x16xf32>, vector<14x16xf32> -> vector<14x16xf32>
    %c0_3 = arith.constant 0 : index
    %c0_4 = arith.constant 0 : index
    %3 = vector.load %arg2[%c0_3, %c0_4] : memref<1x16xf32, #tpu.memory_space<vmem>>, vector<1x16xf32>
    %4 = vector.broadcast %3 : vector<1x16xf32> to vector<14x16xf32>
    %5 = arith.addf %2, %4 : vector<14x16xf32>
    %6 = vector.extract_strided_slice %5 {offsets = [0, 0], sizes = [2, 16], strides = [1, 1]} : vector<14x16xf32> to vector<2x16xf32>
    %7 = vector.extract_strided_slice %5 {offsets = [2, 0], sizes = [12, 16], strides = [1, 1]} : vector<14x16xf32> to vector<12x16xf32>
    %cst_5 = arith.constant dense<0.000000e+00> : vector<2x12xf32>
    %8 = tpu.matmul %6, %7, %cst_5 {dimension_numbers = #tpu.dot_dimension_numbers<[1], [1], [0], [0], [0, 0, 1, 0], [], []>} : vector<2x16xf32>, vector<12x16xf32>, vector<2x12xf32> -> vector<2x12xf32>
    %c0_6 = arith.constant 0 : index
    %c0_7 = arith.constant 0 : index
    %9 = vector.load %arg3[%c0_6, %c0_7] : memref<2x12xf32, #tpu.memory_space<vmem>>, vector<2x12xf32>
    %10 = arith.mulf %8, %9 : vector<2x12xf32>
    %c0_8 = arith.constant 0 : index
    %c0_9 = arith.constant 0 : index
    %11 = vector.load %arg4[%c0_8, %c0_9] : memref<12x6xf32, #tpu.memory_space<vmem>>, vector<12x6xf32>
    %cst_10 = arith.constant dense<0.000000e+00> : vector<2x6xf32>
    %12 = tpu.matmul %10, %11, %cst_10 {dimension_numbers = #tpu.dot_dimension_numbers<[1], [0], [0], [1], [0, 0, 1, 1], [], []>} : vector<2x12xf32>, vector<12x6xf32>, vector<2x6xf32> -> vector<2x6xf32>
    %cst_11 = arith.constant dense<0xFF800000> : vector<2xf32>
    %13 = vector.multi_reduction <maximumf>, %12, %cst_11 [1] : vector<2x6xf32> to vector<2xf32>
    %14 = vector.shape_cast %13 : vector<2xf32> to vector<2x1xf32>
    %15 = vector.broadcast %14 : vector<2x1xf32> to vector<2x6xf32>
    %16 = arith.subf %12, %15 : vector<2x6xf32>
    %17 = math.exp %16 : vector<2x6xf32>
    %cst_12 = arith.constant dense<0.000000e+00> : vector<2xf32>
    %18 = vector.multi_reduction <add>, %17, %cst_12 [1] : vector<2x6xf32> to vector<2xf32>
    %19 = vector.shape_cast %18 : vector<2xf32> to vector<2x1xf32>
    %20 = math.log %19 : vector<2x1xf32>
    %21 = arith.addf %14, %20 : vector<2x1xf32>
    %22 = vector.broadcast %21 : vector<2x1xf32> to vector<2x6xf32>
    %23 = arith.subf %12, %22 : vector<2x6xf32>
    %24 = math.exp %23 : vector<2x6xf32>
    %cst_13 = arith.constant 1.79175949 : f32
    %25 = vector.broadcast %cst_13 : f32 to vector<2x6xf32>
    %26 = arith.addf %23, %25 : vector<2x6xf32>
    %27 = arith.mulf %24, %26 : vector<2x6xf32>
    %cst_14 = arith.constant dense<0.000000e+00> : vector<2xf32>
    %28 = vector.multi_reduction <add>, %27, %cst_14 [1] : vector<2x6xf32> to vector<2xf32>
    %29 = vector.shape_cast %28 : vector<2xf32> to vector<2x1xf32>
    %30 = tpu.concatenate %23, %29 in 1 : vector<2x6xf32>, vector<2x1xf32> -> vector<2x7xf32>
    %c0_15 = arith.constant 0 : index
    %c0_16 = arith.constant 0 : index
    %31 = vector.load %arg5[%c0_15, %c0_16] : memref<2x7xf32, #tpu.memory_space<vmem>>, vector<2x7xf32>
    tpu.vector_store %arg5[%c0_15, %c0_16], %30 {strides = array<i32>} : memref<2x7xf32, #tpu.memory_space<vmem>>, vector<2x7xf32>,
    return
  }
}

module attributes {stable_mosaic.version = 11 : i64} {
  func.func @_main_kernel(%arg0: memref<16x128xf32, #tpu.memory_space<vmem>>, %arg1: memref<8x8xf32, #tpu.memory_space<vmem>>, %arg2: memref<2x4xf32, #tpu.memory_space<vmem>>, %arg3: memref<2x1xf32, #tpu.memory_space<vmem>>, %arg4: memref<2x8xf32, #tpu.memory_space<vmem>>, %arg5: memref<8x4xf32, #tpu.memory_space<vmem>>, %arg6: memref<128x32xf32, #tpu.memory_space<vmem>>, %arg7: memref<1x32xf32, #tpu.memory_space<vmem>>, %arg8: memref<32x16xf32, #tpu.memory_space<vmem>>, %arg9: memref<1x16xf32, #tpu.memory_space<vmem>>, %arg10: memref<16x16xf32, #tpu.memory_space<vmem>>, %arg11: memref<16x16xf32, #tpu.memory_space<vmem>>, %arg12: memref<1x16xf32, #tpu.memory_space<vmem>>, %arg13: memref<8x32xf32, #tpu.memory_space<vmem>>, %arg14: memref<8x32xf32, #tpu.memory_space<vmem>>, %arg15: memref<1x32xf32, #tpu.memory_space<vmem>>, %arg16: memref<32x128xf32, #tpu.memory_space<vmem>>, %arg17: memref<1x128xf32, #tpu.memory_space<vmem>>, %arg18: memref<128x128xf32, #tpu.memory_space<vmem>>, %arg19: memref<2x4xf32, #tpu.memory_space<vmem>>) attributes {dimension_semantics = [], scalar_prefetch = 0 : i64, scratch_operands = 0 : i64, tpu.core_type = #tpu.core_type<tc>} {
    %c0 = arith.constant 0 : index
    %c0_0 = arith.constant 0 : index
    %0 = vector.load %arg0[%c0, %c0_0] : memref<16x128xf32, #tpu.memory_space<vmem>>, vector<16x128xf32>
    %c0_1 = arith.constant 0 : index
    %c0_2 = arith.constant 0 : index
    %1 = vector.load %arg6[%c0_1, %c0_2] : memref<128x32xf32, #tpu.memory_space<vmem>>, vector<128x32xf32>
    %cst = arith.constant dense<0.000000e+00> : vector<16x32xf32>
    %2 = tpu.matmul %0, %1, %cst {dimension_numbers = #tpu.dot_dimension_numbers<[1], [0], [0], [1], [0, 0, 1, 1], [], []>} : vector<16x128xf32>, vector<128x32xf32>, vector<16x32xf32> -> vector<16x32xf32>
    %c0_3 = arith.constant 0 : index
    %c0_4 = arith.constant 0 : index
    %3 = vector.load %arg7[%c0_3, %c0_4] : memref<1x32xf32, #tpu.memory_space<vmem>>, vector<1x32xf32>
    %4 = vector.broadcast %3 : vector<1x32xf32> to vector<16x32xf32>
    %5 = arith.addf %2, %4 : vector<16x32xf32>
    %cst_5 = arith.constant 0.000000e+00 : f32
    %6 = vector.broadcast %cst_5 : f32 to vector<16x32xf32>
    %7 = arith.maximumf %5, %6 : vector<16x32xf32>
    %c0_6 = arith.constant 0 : index
    %c0_7 = arith.constant 0 : index
    %8 = vector.load %arg8[%c0_6, %c0_7] : memref<32x16xf32, #tpu.memory_space<vmem>>, vector<32x16xf32>
    %cst_8 = arith.constant dense<0.000000e+00> : vector<16x16xf32>
    %9 = tpu.matmul %7, %8, %cst_8 {dimension_numbers = #tpu.dot_dimension_numbers<[1], [0], [0], [1], [0, 0, 1, 1], [], []>} : vector<16x32xf32>, vector<32x16xf32>, vector<16x16xf32> -> vector<16x16xf32>
    %c0_9 = arith.constant 0 : index
    %c0_10 = arith.constant 0 : index
    %10 = vector.load %arg9[%c0_9, %c0_10] : memref<1x16xf32, #tpu.memory_space<vmem>>, vector<1x16xf32>
    %11 = vector.broadcast %10 : vector<1x16xf32> to vector<16x16xf32>
    %12 = arith.addf %9, %11 : vector<16x16xf32>
    %13 = vector.extract_strided_slice %12 {offsets = [0, 0], sizes = [8, 16], strides = [1, 1]} : vector<16x16xf32> to vector<8x16xf32>
    %14 = vector.extract_strided_slice %12 {offsets = [8, 0], sizes = [8, 16], strides = [1, 1]} : vector<16x16xf32> to vector<8x16xf32>
    %15 = vector.extract_strided_slice %0 {offsets = [0, 0], sizes = [8, 128], strides = [1, 1]} : vector<16x128xf32> to vector<8x128xf32>
    %16 = vector.extract_strided_slice %0 {offsets = [8, 0], sizes = [8, 128], strides = [1, 1]} : vector<16x128xf32> to vector<8x128xf32>
    %17 = vector.extract_strided_slice %14 {offsets = [0, 0], sizes = [8, 8], strides = [1, 1]} : vector<8x16xf32> to vector<8x8xf32>
    %18 = vector.extract_strided_slice %14 {offsets = [0, 8], sizes = [8, 8], strides = [1, 1]} : vector<8x16xf32> to vector<8x8xf32>
    %c0_11 = arith.constant 0 : index
    %c0_12 = arith.constant 0 : index
    %19 = vector.load %arg10[%c0_11, %c0_12] : memref<16x16xf32, #tpu.memory_space<vmem>>, vector<16x16xf32>
    %cst_13 = arith.constant dense<0.000000e+00> : vector<8x16xf32>
    %20 = tpu.matmul %13, %19, %cst_13 {dimension_numbers = #tpu.dot_dimension_numbers<[1], [0], [0], [1], [0, 0, 1, 1], [], []>} : vector<8x16xf32>, vector<16x16xf32>, vector<8x16xf32> -> vector<8x16xf32>
    %c0_14 = arith.constant 0 : index
    %c0_15 = arith.constant 0 : index
    %21 = vector.load %arg11[%c0_14, %c0_15] : memref<16x16xf32, #tpu.memory_space<vmem>>, vector<16x16xf32>
    %cst_16 = arith.constant dense<0.000000e+00> : vector<8x16xf32>
    %22 = tpu.matmul %14, %21, %cst_16 {dimension_numbers = #tpu.dot_dimension_numbers<[1], [0], [0], [1], [0, 0, 1, 1], [], []>} : vector<8x16xf32>, vector<16x16xf32>, vector<8x16xf32> -> vector<8x16xf32>
    %23 = arith.addf %20, %22 : vector<8x16xf32>
    %c0_17 = arith.constant 0 : index
    %c0_18 = arith.constant 0 : index
    %24 = vector.load %arg12[%c0_17, %c0_18] : memref<1x16xf32, #tpu.memory_space<vmem>>, vector<1x16xf32>
    %25 = vector.broadcast %24 : vector<1x16xf32> to vector<8x16xf32>
    %26 = arith.addf %23, %25 : vector<8x16xf32>
    %27 = vector.extract_strided_slice %26 {offsets = [0, 0], sizes = [8, 8], strides = [1, 1]} : vector<8x16xf32> to vector<8x8xf32>
    %28 = vector.extract_strided_slice %26 {offsets = [0, 8], sizes = [8, 8], strides = [1, 1]} : vector<8x16xf32> to vector<8x8xf32>
    %cst_19 = arith.constant 5.000000e-01 : f32
    %29 = vector.broadcast %cst_19 : f32 to vector<8x8xf32>
    %30 = arith.mulf %29, %28 : vector<8x8xf32>
    %31 = math.exp %30 : vector<8x8xf32>
    %c0_20 = arith.constant 0 : index
    %c0_21 = arith.constant 0 : index
    %32 = vector.load %arg1[%c0_20, %c0_21] : memref<8x8xf32, #tpu.memory_space<vmem>>, vector<8x8xf32>
    %33 = arith.mulf %31, %32 : vector<8x8xf32>
    %34 = arith.addf %27, %33 : vector<8x8xf32>
    %c0_22 = arith.constant 0 : index
    %c0_23 = arith.constant 0 : index
    %35 = vector.load %arg13[%c0_22, %c0_23] : memref<8x32xf32, #tpu.memory_space<vmem>>, vector<8x32xf32>
    %cst_24 = arith.constant dense<0.000000e+00> : vector<8x32xf32>
    %36 = tpu.matmul %34, %35, %cst_24 {dimension_numbers = #tpu.dot_dimension_numbers<[1], [0], [0], [1], [0, 0, 1, 1], [], []>} : vector<8x8xf32>, vector<8x32xf32>, vector<8x32xf32> -> vector<8x32xf32>
    %c0_25 = arith.constant 0 : index
    %c0_26 = arith.constant 0 : index
    %37 = vector.load %arg14[%c0_25, %c0_26] : memref<8x32xf32, #tpu.memory_space<vmem>>, vector<8x32xf32>
    %cst_27 = arith.constant dense<0.000000e+00> : vector<8x32xf32>
    %38 = tpu.matmul %17, %37, %cst_27 {dimension_numbers = #tpu.dot_dimension_numbers<[1], [0], [0], [1], [0, 0, 1, 1], [], []>} : vector<8x8xf32>, vector<8x32xf32>, vector<8x32xf32> -> vector<8x32xf32>
    %39 = arith.addf %36, %38 : vector<8x32xf32>
    %c0_28 = arith.constant 0 : index
    %c0_29 = arith.constant 0 : index
    %40 = vector.load %arg15[%c0_28, %c0_29] : memref<1x32xf32, #tpu.memory_space<vmem>>, vector<1x32xf32>
    %41 = vector.broadcast %40 : vector<1x32xf32> to vector<8x32xf32>
    %42 = arith.addf %39, %41 : vector<8x32xf32>
    %cst_30 = arith.constant 0.000000e+00 : f32
    %43 = vector.broadcast %cst_30 : f32 to vector<8x32xf32>
    %44 = arith.maximumf %42, %43 : vector<8x32xf32>
    %c0_31 = arith.constant 0 : index
    %c0_32 = arith.constant 0 : index
    %45 = vector.load %arg16[%c0_31, %c0_32] : memref<32x128xf32, #tpu.memory_space<vmem>>, vector<32x128xf32>
    %cst_33 = arith.constant dense<0.000000e+00> : vector<8x128xf32>
    %46 = tpu.matmul %44, %45, %cst_33 {dimension_numbers = #tpu.dot_dimension_numbers<[1], [0], [0], [1], [0, 0, 1, 1], [], []>} : vector<8x32xf32>, vector<32x128xf32>, vector<8x128xf32> -> vector<8x128xf32>
    %c0_34 = arith.constant 0 : index
    %c0_35 = arith.constant 0 : index
    %47 = vector.load %arg17[%c0_34, %c0_35] : memref<1x128xf32, #tpu.memory_space<vmem>>, vector<1x128xf32>
    %48 = vector.broadcast %47 : vector<1x128xf32> to vector<8x128xf32>
    %49 = arith.addf %46, %48 : vector<8x128xf32>
    %c0_36 = arith.constant 0 : index
    %c0_37 = arith.constant 0 : index
    %50 = vector.load %arg18[%c0_36, %c0_37] : memref<128x128xf32, #tpu.memory_space<vmem>>, vector<128x128xf32>
    %cst_38 = arith.constant dense<0.000000e+00> : vector<8x128xf32>
    %51 = tpu.matmul %16, %50, %cst_38 {dimension_numbers = #tpu.dot_dimension_numbers<[1], [0], [0], [1], [0, 0, 1, 1], [], []>} : vector<8x128xf32>, vector<128x128xf32>, vector<8x128xf32> -> vector<8x128xf32>
    %52 = arith.addf %49, %51 : vector<8x128xf32>
    %cst_39 = arith.constant 0.000000e+00 : f32
    %53 = vector.broadcast %cst_39 : f32 to vector<8x128xf32>
    %54 = arith.maximumf %52, %53 : vector<8x128xf32>
    %55 = math.absf %52 : vector<8x128xf32>
    %cst_40 = arith.constant 0.000000e+00 : f32
    %56 = vector.broadcast %cst_40 : f32 to vector<8x128xf32>
    %57 = arith.subf %56, %55 : vector<8x128xf32>
    %58 = math.exp %57 : vector<8x128xf32>
    %cst_41 = arith.constant 1.000000e+00 : f32
    %59 = vector.broadcast %cst_41 : f32 to vector<8x128xf32>
    %60 = arith.addf %59, %58 : vector<8x128xf32>
    %61 = math.log %60 : vector<8x128xf32>
    %62 = arith.addf %54, %61 : vector<8x128xf32>
    %63 = arith.mulf %15, %52 : vector<8x128xf32>
    %64 = arith.subf %63, %62 : vector<8x128xf32>
    %cst_42 = arith.constant dense<0.000000e+00> : vector<8xf32>
    %65 = vector.multi_reduction <add>, %64, %cst_42 [1] : vector<8x128xf32> to vector<8xf32>
    %66 = vector.shape_cast %65 : vector<8xf32> to vector<8x1xf32>
    %67 = arith.subf %34, %17 : vector<8x8xf32>
    %68 = arith.mulf %67, %67 : vector<8x8xf32>
    %cst_43 = arith.constant 0.000000e+00 : f32
    %69 = vector.broadcast %cst_43 : f32 to vector<8x8xf32>
    %70 = arith.subf %69, %18 : vector<8x8xf32>
    %71 = math.exp %70 : vector<8x8xf32>
    %72 = arith.mulf %68, %71 : vector<8x8xf32>
    %73 = arith.addf %72, %18 : vector<8x8xf32>
    %cst_44 = arith.constant 1.83787704 : f32
    %74 = vector.broadcast %cst_44 : f32 to vector<8x8xf32>
    %75 = arith.addf %73, %74 : vector<8x8xf32>
    %cst_45 = arith.constant -5.000000e-01 : f32
    %76 = vector.broadcast %cst_45 : f32 to vector<8x8xf32>
    %77 = arith.mulf %76, %75 : vector<8x8xf32>
    %cst_46 = arith.constant dense<0.000000e+00> : vector<8xf32>
    %78 = vector.multi_reduction <add>, %77, %cst_46 [1] : vector<8x8xf32> to vector<8xf32>
    %79 = vector.shape_cast %78 : vector<8xf32> to vector<8x1xf32>
    %80 = arith.subf %34, %27 : vector<8x8xf32>
    %81 = arith.mulf %80, %80 : vector<8x8xf32>
    %cst_47 = arith.constant 0.000000e+00 : f32
    %82 = vector.broadcast %cst_47 : f32 to vector<8x8xf32>
    %83 = arith.subf %82, %28 : vector<8x8xf32>
    %84 = math.exp %83 : vector<8x8xf32>
    %85 = arith.mulf %81, %84 : vector<8x8xf32>
    %86 = arith.addf %85, %28 : vector<8x8xf32>
    %cst_48 = arith.constant 1.83787704 : f32
    %87 = vector.broadcast %cst_48 : f32 to vector<8x8xf32>
    %88 = arith.addf %86, %87 : vector<8x8xf32>
    %cst_49 = arith.constant -5.000000e-01 : f32
    %89 = vector.broadcast %cst_49 : f32 to vector<8x8xf32>
    %90 = arith.mulf %89, %88 : vector<8x8xf32>
    %cst_50 = arith.constant dense<0.000000e+00> : vector<8xf32>
    %91 = vector.multi_reduction <add>, %90, %cst_50 [1] : vector<8x8xf32> to vector<8xf32>
    %92 = vector.shape_cast %91 : vector<8xf32> to vector<8x1xf32>
    %93 = arith.subf %18, %28 : vector<8x8xf32>
    %94 = math.exp %28 : vector<8x8xf32>
    %95 = arith.subf %27, %17 : vector<8x8xf32>
    %96 = arith.mulf %95, %95 : vector<8x8xf32>
    %97 = arith.addf %94, %96 : vector<8x8xf32>
    %cst_51 = arith.constant 0.000000e+00 : f32
    %98 = vector.broadcast %cst_51 : f32 to vector<8x8xf32>
    %99 = arith.subf %98, %18 : vector<8x8xf32>
    %100 = math.exp %99 : vector<8x8xf32>
    %101 = arith.mulf %97, %100 : vector<8x8xf32>
    %102 = arith.addf %93, %101 : vector<8x8xf32>
    %cst_52 = arith.constant 1.000000e+00 : f32
    %103 = vector.broadcast %cst_52 : f32 to vector<8x8xf32>
    %104 = arith.subf %102, %103 : vector<8x8xf32>
    %cst_53 = arith.constant 5.000000e-01 : f32
    %105 = vector.broadcast %cst_53 : f32 to vector<8x8xf32>
    %106 = arith.mulf %105, %104 : vector<8x8xf32>
    %cst_54 = arith.constant dense<0.000000e+00> : vector<8xf32>
    %107 = vector.multi_reduction <add>, %106, %cst_54 [1] : vector<8x8xf32> to vector<8xf32>
    %108 = vector.shape_cast %107 : vector<8xf32> to vector<8x1xf32>
    %109 = arith.addf %66, %79 : vector<8x1xf32>
    %110 = arith.subf %109, %92 : vector<8x1xf32>
    %c0_55 = arith.constant 0 : index
    %c0_56 = arith.constant 0 : index
    %111 = vector.load %arg4[%c0_55, %c0_56] : memref<2x8xf32, #tpu.memory_space<vmem>>, vector<2x8xf32>
    %c0_57 = arith.constant 0 : index
    %c0_58 = arith.constant 0 : index
    %112 = vector.load %arg5[%c0_57, %c0_58] : memref<8x4xf32, #tpu.memory_space<vmem>>, vector<8x4xf32>
    %113 = vector.broadcast %66 : vector<8x1xf32> to vector<8x4xf32>
    %114 = arith.mulf %113, %112 : vector<8x4xf32>
    %cst_59 = arith.constant dense<0.000000e+00> : vector<2x4xf32>
    %115 = tpu.matmul %111, %114, %cst_59 {dimension_numbers = #tpu.dot_dimension_numbers<[1], [0], [0], [1], [0, 0, 1, 1], [], []>} : vector<2x8xf32>, vector<8x4xf32>, vector<2x4xf32> -> vector<2x4xf32>
    %116 = vector.broadcast %108 : vector<8x1xf32> to vector<8x4xf32>
    %117 = arith.mulf %116, %112 : vector<8x4xf32>
    %cst_60 = arith.constant dense<0.000000e+00> : vector<2x4xf32>
    %118 = tpu.matmul %111, %117, %cst_60 {dimension_numbers = #tpu.dot_dimension_numbers<[1], [0], [0], [1], [0, 0, 1, 1], [], []>} : vector<2x8xf32>, vector<8x4xf32>, vector<2x4xf32> -> vector<2x4xf32>
    %c0_61 = arith.constant 0 : index
    %c0_62 = arith.constant 0 : index
    %119 = vector.load %arg2[%c0_61, %c0_62] : memref<2x4xf32, #tpu.memory_space<vmem>>, vector<2x4xf32>
    %120 = vector.broadcast %110 : vector<8x1xf32> to vector<8x4xf32>
    %121 = arith.mulf %120, %112 : vector<8x4xf32>
    %cst_63 = arith.constant dense<0.000000e+00> : vector<2x4xf32>
    %122 = tpu.matmul %111, %121, %cst_63 {dimension_numbers = #tpu.dot_dimension_numbers<[1], [0], [0], [1], [0, 0, 1, 1], [], []>} : vector<2x8xf32>, vector<8x4xf32>, vector<2x4xf32> -> vector<2x4xf32>
    %cst_64 = arith.constant 1.79175949 : f32
    %123 = vector.broadcast %cst_64 : f32 to vector<2x4xf32>
    %124 = arith.subf %122, %123 : vector<2x4xf32>
    %125 = arith.subf %124, %119 : vector<2x4xf32>
    %cst_65 = arith.constant dense<0xFF800000> : vector<2xf32>
    %126 = vector.multi_reduction <maximumf>, %125, %cst_65 [1] : vector<2x4xf32> to vector<2xf32>
    %127 = vector.shape_cast %126 : vector<2xf32> to vector<2x1xf32>
    %128 = vector.broadcast %127 : vector<2x1xf32> to vector<2x4xf32>
    %129 = arith.subf %125, %128 : vector<2x4xf32>
    %130 = math.exp %129 : vector<2x4xf32>
    %cst_66 = arith.constant dense<0.000000e+00> : vector<2xf32>
    %131 = vector.multi_reduction <add>, %130, %cst_66 [1] : vector<2x4xf32> to vector<2xf32>
    %132 = vector.shape_cast %131 : vector<2xf32> to vector<2x1xf32>
    %133 = math.log %132 : vector<2x1xf32>
    %134 = arith.addf %127, %133 : vector<2x1xf32>
    %cst_67 = arith.constant 1.38629436 : f32
    %135 = vector.broadcast %cst_67 : f32 to vector<2x1xf32>
    %136 = arith.subf %134, %135 : vector<2x1xf32>
    %137 = vector.broadcast %134 : vector<2x1xf32> to vector<2x4xf32>
    %138 = arith.subf %125, %137 : vector<2x4xf32>
    %139 = math.exp %138 : vector<2x4xf32>
    %cst_68 = arith.constant 1.000000e-10 : f32
    %cst_69 = arith.constant 0.999989986 : f32
    %140 = vector.broadcast %cst_68 : f32 to vector<2x4xf32>
    %141 = arith.maximumf %140, %139 : vector<2x4xf32>
    %142 = vector.broadcast %cst_69 : f32 to vector<2x4xf32>
    %143 = arith.minimumf %142, %141 : vector<2x4xf32>
    %cst_70 = arith.constant 1.000000e+00 : f32
    %144 = vector.broadcast %cst_70 : f32 to vector<2x4xf32>
    %145 = arith.subf %144, %143 : vector<2x4xf32>
    %146 = math.log %145 : vector<2x4xf32>
    %147 = vector.broadcast %134 : vector<2x1xf32> to vector<2x4xf32>
    %148 = arith.addf %147, %146 : vector<2x4xf32>
    %cst_71 = arith.constant 1.09861231 : f32
    %149 = vector.broadcast %cst_71 : f32 to vector<2x4xf32>
    %150 = arith.subf %148, %149 : vector<2x4xf32>
    %cst_72 = arith.constant 1.38629436 : f32
    %151 = vector.broadcast %cst_72 : f32 to vector<2x1xf32>
    %152 = arith.subf %134, %151 : vector<2x1xf32>
    %153 = vector.broadcast %152 : vector<2x1xf32> to vector<2x4xf32>
    %154 = arith.subf %153, %150 : vector<2x4xf32>
    %155 = arith.subf %154, %139 : vector<2x4xf32>
    %156 = arith.mulf %155, %119 : vector<2x4xf32>
    %cst_73 = arith.constant dense<0.000000e+00> : vector<2xf32>
    %157 = vector.multi_reduction <add>, %156, %cst_73 [1] : vector<2x4xf32> to vector<2xf32>
    %158 = vector.shape_cast %157 : vector<2xf32> to vector<2x1xf32>
    %159 = arith.addf %136, %158 : vector<2x1xf32>
    %cst_74 = arith.constant 0.000000e+00 : f32
    %160 = vector.broadcast %cst_74 : f32 to vector<2x1xf32>
    %161 = arith.subf %160, %159 : vector<2x1xf32>
    %cst_75 = arith.constant dense<0xFF800000> : vector<2xf32>
    %162 = vector.multi_reduction <maximumf>, %115, %cst_75 [1] : vector<2x4xf32> to vector<2xf32>
    %163 = vector.shape_cast %162 : vector<2xf32> to vector<2x1xf32>
    %164 = vector.broadcast %163 : vector<2x1xf32> to vector<2x4xf32>
    %165 = arith.subf %115, %164 : vector<2x4xf32>
    %166 = math.exp %165 : vector<2x4xf32>
    %cst_76 = arith.constant dense<0.000000e+00> : vector<2xf32>
    %167 = vector.multi_reduction <add>, %166, %cst_76 [1] : vector<2x4xf32> to vector<2xf32>
    %168 = vector.shape_cast %167 : vector<2xf32> to vector<2x1xf32>
    %169 = math.log %168 : vector<2x1xf32>
    %170 = arith.addf %163, %169 : vector<2x1xf32>
    %cst_77 = arith.constant 0.000000e+00 : f32
    %171 = vector.broadcast %cst_77 : f32 to vector<2x1xf32>
    %172 = arith.subf %171, %170 : vector<2x1xf32>
    %cst_78 = arith.constant dense<0.000000e+00> : vector<2xf32>
    %173 = vector.multi_reduction <add>, %118, %cst_78 [1] : vector<2x4xf32> to vector<2xf32>
    %174 = vector.shape_cast %173 : vector<2xf32> to vector<2x1xf32>
    %cst_79 = arith.constant 4.000000e+00 : f32
    %175 = vector.broadcast %cst_79 : f32 to vector<2x1xf32>
    %176 = arith.divf %174, %175 : vector<2x1xf32>
    %177 = arith.addf %172, %176 : vector<2x1xf32>
    %c0_80 = arith.constant 0 : index
    %c0_81 = arith.constant 0 : index
    %178 = vector.load %arg3[%c0_80, %c0_81] : memref<2x1xf32, #tpu.memory_space<vmem>>, vector<2x1xf32>
    %179 = arith.addf %177, %178 : vector<2x1xf32>
    %180 = tpu.concatenate %161, %172, %176, %179 in 1 : vector<2x1xf32>, vector<2x1xf32>, vector<2x1xf32>, vector<2x1xf32> -> vector<2x4xf32>
    %c0_82 = arith.constant 0 : index
    %c0_83 = arith.constant 0 : index
    %181 = vector.load %arg19[%c0_82, %c0_83] : memref<2x4xf32, #tpu.memory_space<vmem>>, vector<2x4xf32>
    tpu.vector_store %arg19[%c0_82, %c0_83], %180 {strides = array<i32>} : memref<2x4xf32, #tpu.memory_space<vmem>>, vector<2x4xf32>,
    return
  }
}

</mosaic_0001>

<bundles_post_ra>
// kernel: vma_forward.4
= control target key start
LH: loop header
LB: loop body
LE: loop exit
PB: predicated region body
PF: predicated region fallthrough
CT: control target
= control target key end

     0   :  { %vm71_vm0 = vcmask 130048   ;;  %vm67_vm1 = vcmask 1045504   ;;  %vm106_vm2 = vcmask 1043456   ;;  %vm102_vm3 = vcmask 97280   ;;  %s289_s1 = inlined_call_operand.vmem [shape: f32[128,16], index: 1, kind: input, shape index: {}]   ;;  %s290_s2 = inlined_call_operand.vmem [shape: f32[1,16], index: 2, kind: input, shape index: {}]   ;;  %s291_s0 = inlined_call_operand.vmem [shape: f32[14,128], index: 0, kind: input, shape index: {}]   ;;  %s292_s4 = inlined_call_operand.vmem [shape: f32[12,6], index: 4, kind: input, shape index: {}]   ;;  %s293_s3 = inlined_call_operand.vmem [shape: f32[2,12], index: 3, kind: input, shape index: {}]   ;;  %s294_s5 = inlined_call_operand.vmem [shape: f32[2,7], index: 5, kind: output, shape index: {}]  }
   0x1   :  { %v37_v0 = vld [vmem:[%s289_s1 + $0x78] sm:$0xff]  ;;  %v36_v1 = vld [vmem:[%s289_s1 + $0x70] sm:$0xff]  ;;  %v35_v2 = vld [vmem:[%s289_s1 + $0x68] sm:$0xff]  ;;  %vm130_vm4 = vcmask 41984   ;;  %vm151_vm5 = vcmask 48128   ;;  %vm153_vm6 = vcmask 50176  }
   0x2   :  { %164 = vmatpush.msra.mxu3 %v37_v0  ;;  %42 = vmatpush.msra.mxu0 %v37_v0  ;;  %v34_v3 = vld [vmem:[%s289_s1 + $0x60] sm:$0xff]  ;;  %v33_v4 = vld [vmem:[%s289_s1 + $0x58] sm:$0xff]  ;;  %v32_v5 = vld [vmem:[%s289_s1 + $0x50] sm:$0xff] }
   0x3   :  { %v31_v6 = vld [vmem:[%s289_s1 + $0x48] sm:$0xff]  ;;  %v30_v7 = vld [vmem:[%s289_s1 + $0x40] sm:$0xff]  ;;  %v29_v8 = vld [vmem:[%s289_s1 + $0x38] sm:$0xff] }
   0x4   :  { %165 = vmatpush.msra.mxu3 %v36_v1  ;;  %43 = vmatpush.msra.mxu0 %v36_v1  ;;  %v28_v9 = vld [vmem:[%s289_s1 + $0x30] sm:$0xff]  ;;  %v27_v10 = vld [vmem:[%s289_s1 + $0x28] sm:$0xff]  ;;  %v26_v11 = vld [vmem:[%s289_s1 + $0x20] sm:$0xff] }
   0x5   :  { %v25_v12 = vld [vmem:[%s289_s1 + $0x18] sm:$0xff]  ;;  %v24_v13 = vld [vmem:[%s289_s1 + $0x10] sm:$0xff]  ;;  %v23_v14 = vld [vmem:[%s289_s1 + $0x8] sm:$0xff] }
   0x6   :  { %166 = vmatpush.msra.mxu3 %v35_v2  ;;  %44 = vmatpush.msra.mxu0 %v35_v2  ;;  %v22_v15 = vld [vmem:[%s289_s1] sm:$0xff]  ;;  %v21_v16 = vld [vmem:[%s291_s0 + $0x8] sm:$0x3f] }
   0x7   :  { %v20_v17 = vld [vmem:[%s291_s0] sm:$0xff]  ;;  %v101_v26 = vld [vmem:[%s292_s4 + $0x8] sm:$0xf] }
   0x8   :  { %167 = vmatpush.msra.mxu3 %v34_v3  ;;  %45 = vmatpush.msra.mxu0 %v34_v3  ;;  %v180_v18 = vld [vmem:[%s290_s2] ss:$0 sm:$0xff] }
   0x9   :  { %162 = vmatpush.msk.msra.mxu2 %vm106_vm2, %v101_v26  ;;  %v100_v27 = vld [vmem:[%s292_s4] sm:$0xff] }
   0xa   :  { %168 = vmatpush.msra.mxu3 %v33_v4  ;;  %46 = vmatpush.msra.mxu0 %v33_v4  ;;  %v98_v28 = vld [vmem:[%s293_s3] sm:$0x3] }
   0xb   :  { %125 = vmatpush.msra.mxu2 %v100_v27 }
   0xc   :  { %169 = vmatpush.msra.mxu3 %v32_v5  ;;  %47 = vmatpush.msra.mxu0 %v32_v5 }
   0xe   :  { %170 = vmatpush.msra.mxu3 %v31_v6  ;;  %48 = vmatpush.msra.mxu0 %v31_v6 }
  0x10   :  { %171 = vmatpush.msra.mxu3 %v30_v7  ;;  %49 = vmatpush.msra.mxu0 %v30_v7 }
  0x12   :  { %172 = vmatpush.msra.mxu3 %v29_v8  ;;  %50 = vmatpush.msra.mxu0 %v29_v8 }
  0x14   :  { %173 = vmatpush.msra.mxu3 %v28_v9  ;;  %51 = vmatpush.msra.mxu0 %v28_v9 }
  0x16   :  { %174 = vmatpush.msra.mxu3 %v27_v10  ;;  %52 = vmatpush.msra.mxu0 %v27_v10 }
  0x18   :  { %175 = vmatpush.msra.mxu3 %v26_v11  ;;  %53 = vmatpush.msra.mxu0 %v26_v11 }
  0x1a   :  { %176 = vmatpush.msra.mxu3 %v25_v12  ;;  %54 = vmatpush.msra.mxu0 %v25_v12 }
  0x1c   :  { %177 = vmatpush.msra.mxu3 %v24_v13  ;;  %55 = vmatpush.msra.mxu0 %v24_v13 }
  0x1e   :  { %178 = vmatpush.msra.mxu3 %v23_v14  ;;  %56 = vmatpush.msra.mxu0 %v23_v14 }
  0x20   :  { %179 = vmatpush.msra.mxu3 %v22_v15  ;;  %57 = vmatpush.msra.mxu0 %v22_v15 }
  0x21   :  { %61 = vmatmul.f32.vlgmr.msra.gmra.mxu3 %v21_v16  ;;  %58 = vmatmul.f32.vlgmr.msra.gmra.mxu0 %v20_v17 }
  0x9e   :  { %v59_v19 = vpop.f32.mrf.mxu0 }
  0x9f   :  { %v60_v20 = vadd.f32 %v180_v18, %v59_v19 }
  0xa1   :  { %v68_v24 = vrot.slane %v60_v20, 2 }
  0xa4   :  { %v62_v21 = vpop.f32.mrf.mxu3 }
  0xa5   :  { %v63_v22 = vadd.f32 %v180_v18, %v62_v21 }
  0xa7   :  { %v69_v23 = vrot.slane %v63_v22, 2 }
  0xa9   :  { %159 = vmatpush.xpose.msk.msra.mxu1 %vm71_vm0, %v69_v23  ;;  %v70_v25 = vsel %vm67_vm1, %v68_v24, %v69_v23 }
  0xad   :  { %160 = vmatpush.xpose.msk.msra.mxu1 %vm71_vm0, %v70_v25 }
  0xb0   :  { %161 = vmatmul.msk.f32.vlgmr.msra.gmra.mxu1 %vm71_vm0, %v60_v20 }
 0x12d   :  { %v95_v29 = vpop.f32.mrf.mxu1 }
 0x12e   :  { %v99_v30 = vmul.f32 %v98_v28, %v95_v29 }
 0x130   :  { %163 = vmatmul.msk.f32.vlgmr.msra.gmra.mxu2 %vm102_vm3, %v99_v30 }
 0x1b3   :  { %v127_v31 = vpop.f32.mrf.mxu2 }
 0x1b4   :  { %v131_v32 = vsel %vm130_vm4, %v127_v31, -inf }
 0x1b5   :  { %132 = vmax.xlane.f32.xlu0 %v131_v32 }
 0x228   :  { %v133_v33 = vpop.xlane.xlu0 %132 }
 0x229   :  { %v134_v34 = vsub.f32 %v127_v31, %v133_v33 }
 0x22b   :  { %v135_v35 = vmul.f32 1.442695, %v134_v34 }
 0x22d   :  { %181 = vpow2.f32 %v135_v35 }
 0x233   :  { %v182_v36 = vpop.eup %181 }
 0x234   :  { %v137_v37 = vsel %vm130_vm4, %v182_v36, 0.0 }
 0x235   :  { %138 = vadd.xlane.f32.xlu0 %v137_v37 }
 0x2a8   :  { %v139_v38 = vpop.xlane.xlu0 %138 }
 0x2a9   :  { %183 = vlog2.f32 %v139_v38 }
 0x2af   :  { %v184_v39 = vpop.eup %183 }
 0x2b0   :  { %v141_v40 = vmul.f32 0.6931472, %v184_v39 }
 0x2b2   :  { %v142_v41 = vadd.f32 %v141_v40, %v133_v33 }
 0x2b4   :  { %v143_v42 = vsub.f32 %v127_v31, %v142_v41 }
 0x2b6   :  { %v144_v43 = vmul.f32 1.442695, %v143_v42  ;;  %v146_v44 = vadd.f32 1.7917595, %v143_v42 }
 0x2b8   :  { %185 = vpow2.f32 %v144_v43 }
 0x2be   :  { %v186_v45 = vpop.eup %185 }
 0x2bf   :  { %v147_v46 = vmul.f32 %v186_v45, %v146_v44 }
 0x2c1   :  { %v148_v47 = vsel %vm130_vm4, %v147_v46, 0.0 }
 0x2c2   :  { %149 = vadd.xlane.f32.xlu1 %v148_v47 }
 0x335   :  { %v150_v48 = vpop.xlane.xlu1 %149 }
 0x336   :  { %v152_v49 = vsel %vm151_vm5, %v143_v42, %v150_v48 }
 0x337   :  { %154 = vst.msk [vmem:[%s294_s5] sm:$0x3] %vm153_vm6, %v152_v49 }

// kernel: vma_forward.5
= control target key start
LH: loop header
LB: loop body
LE: loop exit
PB: predicated region body
PF: predicated region fallthrough
CT: control target
= control target key end

     0   :  { %vm117_vm0 = vcmask 261120   ;;  %s608_s23 = smov 8   ;;  %vm151_vm1 = vcmask 130048   ;;  %vm219_vm2 = vcmask 64512   ;;  %vm485_vm3 = vcmask 25600   ;;  %s611_s25 = smov 3   ;;  %s946_s6 = inlined_call_operand.vmem [shape: f32[128,32], index: 6, kind: input, shape index: {}]   ;;  %s947_s8 = inlined_call_operand.vmem [shape: f32[32,16], index: 8, kind: input, shape index: {}]   ;;  %s948_s7 = inlined_call_operand.vmem [shape: f32[1,32], index: 7, kind: input, shape index: {}]   ;;  %s949_s0 = inlined_call_operand.vmem [shape: f32[16,128], index: 0, kind: input, shape index: {}]   ;;  %s950_s9 = inlined_call_operand.vmem [shape: f32[1,16], index: 9, kind: input, shape index: {}]   ;;  %s951_s10 = inlined_call_operand.vmem [shape: f32[16,16], index: 10, kind: input, shape index: {}]   ;;  %s952_s11 = inlined_call_operand.vmem [shape: f32[16,16], index: 11, kind: input, shape index: {}]   ;;  %s953_s14 = inlined_call_operand.vmem [shape: f32[8,32], index: 14, kind: input, shape index: {}]   ;;  %s954_s1 = inlined_call_operand.vmem [shape: f32[8,8], index: 1, kind: input, shape index: {}]   ;;  %s955_s12 = inlined_call_operand.vmem [shape: f32[1,16], index: 12, kind: input, shape index: {}]   ;;  %s956_s13 = inlined_call_operand.vmem [shape: f32[8,32], index: 13, kind: input, shape index: {}]   ;;  %s957_s15 = inlined_call_operand.vmem [shape: f32[1,32], index: 15, kind: input, shape index: {}]   ;;  %s958_s18 = inlined_call_operand.vmem [shape: f32[128,128], index: 18, kind: input, shape index: {}]   ;;  %s959_s17 = inlined_call_operand.vmem [shape: f32[1,128], index: 17, kind: input, shape index: {}]   ;;  %s960_s16 = inlined_call_operand.vmem [shape: f32[32,128], index: 16, kind: input, shape index: {}]   ;;  %s961_s5 = inlined_call_operand.vmem [shape: f32[8,4], index: 5, kind: input, shape index: {}]   ;;  %s962_s4 = inlined_call_operand.vmem [shape: f32[2,8], index: 4, kind: input, shape index: {}]   ;;  %s963_s2 = inlined_call_operand.vmem [shape: f32[2,4], index: 2, kind: input, shape index: {}]   ;;  %s964_s3 = inlined_call_operand.vmem [shape: f32[2,1], index: 3, kind: input, shape index: {}]   ;;  %s965_s19 = inlined_call_operand.vmem [shape: f32[2,4], index: 19, kind: output, shape index: {}]  }
   0x1   :  { %969 = sst [smem:[#allocation2_spill]] %s946_s6  ;;  %v148_v29 = vld [vmem:[%s951_s10 + $0x8] sm:$0xff]  ;;  %v147_v30 = vld [vmem:[%s951_s10] sm:$0xff]  ;;  %vm548_vm5 = vcmask 7168   ;;  %vm550_vm6 = vcmask 15360   ;;  %vm552_vm7 = vcmask 23552  }
   0x2   :  { %970 = sst [smem:[#allocation3_spill]] %s947_s8  ;;  %192 = vmatpush.msra.mxu3 %v148_v29  ;;  %v150_v31 = vld [vmem:[%s952_s11 + $0x8] sm:$0xff]  ;;  %v149_v32 = vld [vmem:[%s952_s11] sm:$0xff] }
   0x3   :  { %971 = sst [smem:[#allocation4_spill]] %s948_s7  ;;  %169 = vmatpush.msra.mxu2 %v150_v31  ;;  %v218_v33 = vld [vmem:[%s953_s14] sm:$0xff]  ;;  %v272_v29 = vld [vmem:[%s960_s16 + $0x8] sm:$0xff] }
   0x4   :  { %972 = sst [smem:[#allocation5_spill]] %s949_s0  ;;  %193 = vmatpush.msra.mxu3 %v147_v30  ;;  %v578_v34 = vld [vmem:[%s950_s9] ss:$0 sm:$0xff]  ;;  %v307_v30 = vld [vmem:[%s958_s18 + $0x28] sm:$0xff] }
   0x5   :  { %s973_s20 = sld [smem:[#allocation2_spill]]  ;;  %170 = vmatpush.msra.mxu2 %v149_v32  ;;  %v206_v35 = vld [vmem:[%s954_s1] sm:$0xff]  ;;  %s609_s1 = smov 120  }
   0x6   :  { %s974_s6 = sld [smem:[#allocation3_spill]]  ;;  %208 = vrot.lane.b32.xlu0 %v206_v35, %s608_s23  ;;  %v579_v43 = vld [vmem:[%s955_s12] ss:$0 sm:$0xff]  ;;  %v303_v35 = vld [vmem:[%s958_s18 + $0x8] sm:$0xff] }
   0x7   :  { %s975_s26 = sld [smem:[#allocation5_spill]]  ;;  %237 = vmatpush.msrb.mxu2 %v218_v33  ;;  %v217_v56 = vld [vmem:[%s956_s13] sm:$0xff]  ;;  %v305_v33 = vld [vmem:[%s958_s18 + $0x18] sm:$0xff] }
   0x8   :  { %s976_s24 = sld [smem:[#allocation4_spill]]  ;;  %260 = vmatpush.msrb.mxu3 %v217_v56  ;;  %v271_v31 = vld [vmem:[%s960_s16] sm:$0xff] }
   0x9   :  { %v306_v32 = vld [vmem:[%s958_s18 + $0x20] sm:$0xff] }
   0xb   :  { %v79_v0 = vld [vmem:[%s973_s20 + $0x78] sm:$0xff]  ;;  %v78_v1 = vld [vmem:[%s973_s20 + $0x70] sm:$0xff]  ;;  %v77_v2 = vld [vmem:[%s973_s20 + $0x68] sm:$0xff] }
   0xc   :  { %84 = vmatpush.msra.mxu0 %v79_v0  ;;  %v76_v3 = vld [vmem:[%s973_s20 + $0x60] sm:$0xff]  ;;  %v75_v4 = vld [vmem:[%s973_s20 + $0x58] sm:$0xff]  ;;  %v74_v5 = vld [vmem:[%s973_s20 + $0x50] sm:$0xff] }
   0xd   :  { %v112_v6 = vld [vmem:[%s974_s6 + $0x18] sm:$0xff]  ;;  %v73_v7 = vld [vmem:[%s973_s20 + $0x48] sm:$0xff]  ;;  %v72_v8 = vld [vmem:[%s973_s20 + $0x40] sm:$0xff] }
   0xe   :  { %85 = vmatpush.msra.mxu0 %v78_v1  ;;  %136 = vmatpush.msra.mxu1 %v112_v6  ;;  %v71_v9 = vld [vmem:[%s973_s20 + $0x38] sm:$0xff]  ;;  %v70_v10 = vld [vmem:[%s973_s20 + $0x30] sm:$0xff]  ;;  %v69_v11 = vld [vmem:[%s973_s20 + $0x28] sm:$0xff] }
   0xf   :  { %v68_v12 = vld [vmem:[%s973_s20 + $0x20] sm:$0xff]  ;;  %v67_v13 = vld [vmem:[%s973_s20 + $0x18] sm:$0xff]  ;;  %v66_v14 = vld [vmem:[%s973_s20 + $0x10] sm:$0xff] }
  0x10   :  { %86 = vmatpush.msra.mxu0 %v77_v2  ;;  %v65_v15 = vld [vmem:[%s973_s20 + $0x8] sm:$0xff]  ;;  %v64_v16 = vld [vmem:[%s973_s20] sm:$0xff]  ;;  %v111_v19 = vld [vmem:[%s974_s6 + $0x10] sm:$0xff] }
  0x11   :  { %v766_v17 = vld [vmem:[%s975_s26] sm:$0xff]  ;;  %v772_v18 = vld [vmem:[%s975_s26 + $0x8] sm:$0xff]  ;;  %137 = vmatpush.msra.mxu1 %v111_v19  ;;  %v316_v6 = vld [vmem:[%s958_s18 + $0x70] sm:$0xff] }
  0x12   :  { %87 = vmatpush.msra.mxu0 %v76_v3  ;;  %v110_v20 = vld [vmem:[%s974_s6 + $0x8] sm:$0xff]  ;;  %v109_v21 = vld [vmem:[%s974_s6] sm:$0xff] }
  0x13   :  { %138 = vmatpush.msra.mxu1 %v110_v20  ;;  %v577_v22 = vld [vmem:[%s976_s24] ss:$0 sm:$0xff]  ;;  %v312_v20 = vld [vmem:[%s958_s18 + $0x50] sm:$0xff] }
  0x14   :  { %88 = vmatpush.msra.mxu0 %v75_v4 }
  0x15   :  { %139 = vmatpush.msra.mxu1 %v109_v21  ;;  %v311_v21 = vld [vmem:[%s958_s18 + $0x48] sm:$0xff] }
  0x16   :  { %89 = vmatpush.msra.mxu0 %v74_v5  ;;  %v317_v5 = vld [vmem:[%s958_s18 + $0x78] sm:$0xff] }
  0x17   :  { %318 = vmatpush.msrb.mxu1 %v317_v5 }
  0x18   :  { %90 = vmatpush.msra.mxu0 %v73_v7 }
  0x19   :  { %319 = vmatpush.msrb.mxu1 %v316_v6 }
  0x1a   :  { %91 = vmatpush.msra.mxu0 %v72_v8 }
  0x1c   :  { %92 = vmatpush.msra.mxu0 %v71_v9  ;;  %v315_v9 = vld [vmem:[%s958_s18 + $0x68] sm:$0xff] }
  0x1d   :  { %320 = vmatpush.msrb.mxu1 %v315_v9 }
  0x1e   :  { %93 = vmatpush.msra.mxu0 %v70_v10 }
  0x20   :  { %94 = vmatpush.msra.mxu0 %v69_v11 }
  0x22   :  { %95 = vmatpush.msra.mxu0 %v68_v12  ;;  %v314_v12 = vld [vmem:[%s958_s18 + $0x60] sm:$0xff] }
  0x23   :  { %321 = vmatpush.msrb.mxu1 %v314_v12 }
  0x24   :  { %96 = vmatpush.msra.mxu0 %v67_v13 }
  0x26   :  { %97 = vmatpush.msra.mxu0 %v66_v14 }
  0x28   :  { %98 = vmatpush.msra.mxu0 %v65_v15  ;;  %v313_v15 = vld [vmem:[%s958_s18 + $0x58] sm:$0xff] }
  0x29   :  { %322 = vmatpush.msrb.mxu1 %v313_v15 }
  0x2a   :  { %99 = vmatpush.msra.mxu0 %v64_v16 }
  0x2b   :  { %100 = vmatmul.f32.vlgmr.msra.gmra.mxu0 %v766_v17  ;;  %323 = vmatpush.msrb.mxu1 %v312_v20 }
  0x2d   :  { %324 = vmatpush.msrb.mxu1 %v311_v21 }
  0x33   :  { %103 = vmatmul.f32.gmra.mxu0 %v772_v18 }
  0x78   :  { %v209_v52 = vpop.permute.xlu0 %208 }
  0xa8   :  { %v101_v23 = vpop.f32.mrf.mxu0 }
  0xa9   :  { %v102_v24 = vadd.f32 %v577_v22, %v101_v23 }
  0xab   :  { %v107_v25 = vmax.f32 %v102_v24, 0.0  ;;  %v310_v24 = vld [vmem:[%s958_s18 + $0x40] sm:$0xff] }
  0xac   :  { %325 = vmatpush.msrb.mxu1 %v310_v24 }
  0xad   :  { %559 = vmatmul.msk.f32.vlgmr.msra.gmra.mxu1 %vm117_vm0, %v107_v25  ;;  %v274_v25 = vld [vmem:[%s960_s16 + $0x18] sm:$0xff] }
  0xb0   :  { %v104_v26 = vpop.f32.mrf.mxu0 }
  0xb1   :  { %v105_v27 = vadd.f32 %v577_v22, %v104_v26  ;;  %v309_v26 = vld [vmem:[%s958_s18 + $0x38] sm:$0xff] }
  0xb2   :  { %326 = vmatpush.msrb.mxu1 %v309_v26 }
  0xb3   :  { %v108_v28 = vmax.f32 %v105_v27, 0.0  ;;  %v273_v27 = vld [vmem:[%s960_s16 + $0x10] sm:$0xff] }
  0xb5   :  { %560 = vmatmul.msk.f32.gmra.mxu1 %vm117_vm0, %v108_v28  ;;  %v308_v28 = vld [vmem:[%s958_s18 + $0x30] sm:$0xff] }
  0xb6   :  { %327 = vmatpush.msrb.mxu1 %v308_v28 }
  0xb8   :  { %328 = vmatpush.msrb.mxu1 %v307_v30 }
  0xba   :  { %329 = vmatpush.msrb.mxu1 %v306_v32 }
  0xbc   :  { %330 = vmatpush.msrb.mxu1 %v305_v33 }
 0x12a   :  { %v141_v36 = vpop.f32.mrf.mxu1 }
 0x12b   :  { %v142_v37 = vadd.f32 %v578_v34, %v141_v36  ;;  %v302_v36 = vld [vmem:[%s958_s18] sm:$0xff] }
 0x12d   :  { %562 = vmatmul.msk.f32.vlgmr.msra.gmra.mxu3 %vm151_vm1, %v142_v37  ;;  %v580_v37 = vld [vmem:[%s957_s15] ss:$0 sm:$0xff] }
 0x132   :  { %v144_v38 = vpop.f32.mrf.mxu1 }
 0x133   :  { %v811_v39 = vadd.f32 %v578_v34, %v144_v38  ;;  %v304_v34 = vld [vmem:[%s958_s18 + $0x10] sm:$0xff] }
 0x134   :  { %331 = vmatpush.msrb.mxu1 %v304_v34 }
 0x135   :  { %561 = vmatmul.msk.f32.vlgmr.msra.gmra.mxu2 %vm151_vm1, %v811_v39  ;;  %v354_v40 = vsub.f32 0.0, %v811_v39 }
 0x136   :  { %294 = vmatpush.msra.mxu2 %v274_v25  ;;  %332 = vmatpush.msrb.mxu1 %v303_v35 }
 0x137   :  { %v355_v41 = vmul.f32 1.442695, %v354_v40 }
 0x138   :  { %295 = vmatpush.msra.mxu2 %v273_v27  ;;  %333 = vmatpush.msrb.mxu1 %v302_v36 }
 0x139   :  { %582 = vpow2.f32 %v355_v41  ;;  %334 = vmatmul.f32.vlgmr.msrb.gmra.mxu1 %v772_v18 }
 0x13a   :  { %296 = vmatpush.msra.mxu2 %v272_v29 }
 0x13c   :  { %297 = vmatpush.msra.mxu2 %v271_v31 }
 0x13d   :  { %563 = vmatmul.msk.f32.vlgmr.msrb.gmra.mxu2 %vm219_vm2, %v811_v39 }
 0x13f   :  { %v817_v42 = vpop.eup %582 }
 0x140   :  { %358 = vrot.lane.b32.xlu1 %v817_v42, %s609_s1 }
 0x148   :  { %362 = vrot.lane.b32.xlu1 %v811_v39, %s609_s1 }
 0x1b0   :  { %v195_v44 = vpop.f32.mrf.mxu3 }
 0x1b2   :  { %v359_v57 = vpop.permute.xlu1 %358 }
 0x1b8   :  { %v172_v45 = vpop.f32.mrf.mxu2 }
 0x1b9   :  { %v196_v46 = vadd.f32 %v195_v44, %v172_v45  ;;  %v581_v45 = vld [vmem:[%s959_s17] ss:$0 sm:$0xff] }
 0x1ba   :  { %v363_v3 = vpop.permute.xlu1 %362 }
 0x1bb   :  { %v826_v47 = vadd.f32 %v579_v43, %v196_v46 }
 0x1bd   :  { %v203_v48 = vmul.f32 0.5, %v826_v47  ;;  %v373_v49 = vsub.f32 0.0, %v826_v47  ;;  %v394_v22 = vsub.f32 %v826_v47, %v811_v39  ;;  %v392_v56 = vmul.f32 1.442695, %v826_v47 }
 0x1bf   :  { %v204_v50 = vmul.f32 1.442695, %v203_v48  ;;  %v374_v51 = vmul.f32 1.442695, %v373_v49  ;;  %v395_v23 = vmul.f32 %v394_v22, %v394_v22  ;;  %v335_v48 = vpop.f32.mrf.mxu1 }
 0x1c0   :  { %v239_v38 = vpop.f32.mrf.mxu2 }
 0x1c1   :  { %584 = vpow2.f32 %v204_v50 }
 0x1c2   :  { %586 = vpow2.f32 %v374_v51 }
 0x1c7   :  { %v585_v53 = vpop.eup %584 }
 0x1c8   :  { %v587_v54 = vpop.eup %586  ;;  %v211_v55 = vmul.f32 %v585_v53, %v209_v52 }
 0x1c9   :  { %377 = vrot.lane.b32.xlu2 %v587_v54, %s609_s1 }
 0x1ca   :  { %213 = vrot.lane.b32.xlu0 %v211_v55, %s609_s1 }
 0x1d1   :  { %382 = vrot.lane.b32.xlu2 %v826_v47, %s609_s1 }
 0x223   :  { %v378_v58 = vpop.permute.xlu2 %377 }
 0x22b   :  { %v383_v4 = vpop.permute.xlu2 %382 }
 0x23c   :  { %v214_v59 = vpop.permute.xlu0 %213 }
 0x23d   :  { %v216_v60 = vadd.f32 %v214_v59, %v826_v47 }
 0x23f   :  { %v352_v61 = vsub.f32 %v216_v60, %v811_v39  ;;  %v371_v62 = vsub.f32 %v216_v60, %v826_v47  ;;  %564 = vmatmul.msk.f32.vlgmr.msrb.gmra.mxu3 %vm219_vm2, %v216_v60 }
 0x241   :  { %v353_v63 = vmul.f32 %v352_v61, %v352_v61  ;;  %v372_v0 = vmul.f32 %v371_v62, %v371_v62 }
 0x243   :  { %v380_v1 = vmul.f32 %v378_v58, %v372_v0  ;;  %v361_v2 = vmul.f32 %v359_v57, %v353_v63 }
 0x245   :  { %v385_v7 = vadd.f32 %v383_v4, %v380_v1  ;;  %v365_v8 = vadd.f32 %v363_v3, %v361_v2  ;;  %v391_v3 = vsub.f32 %v811_v39, %v826_v47 }
 0x247   :  { %v386_v10 = vadd.f32 1.837877, %v385_v7  ;;  %v366_v11 = vadd.f32 1.837877, %v365_v8  ;;  %v415_v7 = vld [vmem:[%s961_s5] sm:$0xff] }
 0x249   :  { %v387_v13 = vmul.f32 -0.5, %v386_v10  ;;  %v367_v14 = vmul.f32 -0.5, %v366_v11 }
 0x24b   :  { %v388_v16 = vsel %vm219_vm2, %v387_v13, 0.0  ;;  %v368_v19 = vsel %vm219_vm2, %v367_v14, 0.0 }
 0x24c   :  { %389 = vadd.xlane.f32.xlu2 %v388_v16  ;;  %369 = vadd.xlane.f32.xlu1 %v368_v19  ;;  %v461_v16 = vld [vmem:[%s963_s2] sm:$0x3] }
 0x264   :  { %397 = vrot.lane.b32.xlu2 %v395_v23, %s608_s23 }
 0x2bf   :  { %v390_v55 = vpop.xlane.xlu2 %389 }
 0x2c2   :  { %v262_v40 = vpop.f32.mrf.mxu3 }
 0x2c3   :  { %v263_v41 = vadd.f32 %v262_v40, %v239_v38 }
 0x2c5   :  { %v269_v43 = vadd.f32 %v580_v37, %v263_v41 }
 0x2c7   :  { %v270_v44 = vmax.f32 %v269_v43, 0.0  ;;  %v398_v63 = vpop.permute.xlu2 %397 }
 0x2c9   :  { %565 = vmatmul.msk.f32.vlgmr.msra.gmra.mxu2 %vm117_vm0, %v270_v44 }
 0x34c   :  { %v299_v46 = vpop.f32.mrf.mxu2 }
 0x34d   :  { %v300_v49 = vadd.f32 %v581_v45, %v299_v46 }
 0x34f   :  { %v338_v50 = vadd.f32 %v335_v48, %v300_v49 }
 0x351   :  { %v340_v18 = vand.u32 2147483647, %v338_v50  ;;  %v339_v58 = vmax.f32 %v338_v50, 0.0  ;;  %v348_v61 = vmul.f32 %v338_v50, %v766_v17  ;;  %v370_v17 = vpop.xlane.xlu1 %369 }
 0x353   :  { %v341_v51 = vsub.f32 0.0, %v340_v18  ;;  %v610_v18 = vmov 4.0  }
 0x355   :  { %v342_v52 = vmul.f32 1.442695, %v341_v51 }
 0x357   :  { %588 = vpow2.f32 %v342_v52 }
 0x35d   :  { %v589_v53 = vpop.eup %588 }
 0x35e   :  { %v344_v54 = vadd.f32 1.0, %v589_v53 }
 0x360   :  { %590 = vlog2.f32 %v344_v54 }
 0x361   :  { %592 = vpow2.f32 %v392_v56 }
 0x366   :  { %v591_v57 = vpop.eup %590 }
 0x367   :  { %v346_v59 = vmul.f32 0.6931472, %v591_v57  ;;  %v593_v0 = vpop.eup %592 }
 0x368   :  { %v400_v1 = vadd.f32 %v593_v0, %v398_v63 }
 0x369   :  { %v347_v60 = vadd.f32 %v346_v59, %v339_v58 }
 0x36a   :  { %v401_v2 = vmul.f32 %v817_v42, %v400_v1  ;;  %v414_v42 = vld [vmem:[%s962_s4] sm:$0x3] }
 0x36b   :  { %v349_v62 = vsub.f32 %v348_v61, %v347_v60 }
 0x36c   :  { %v402_v4 = vadd.f32 %v401_v2, %v391_v3 }
 0x36d   :  { %350 = vadd.xlane.f32.xlu0 %v349_v62 }
 0x36e   :  { %v566_v5 = vadd.f32 -1.0, %v402_v4 }
 0x370   :  { %v404_v6 = vmul.f32 0.5, %v566_v5 }
 0x381   :  { %406 = vrot.lane.b32.xlu0 %v404_v6, %s609_s1 }
 0x3e0   :  { %v351_v8 = vpop.xlane.xlu0 %350 }
 0x3e1   :  { %v412_v9 = vadd.f32 %v370_v17, %v351_v8  ;;  %v416_v10 = vmul.f32 %v415_v7, %v351_v8  ;;  %v542_v17 = vld [vmem:[%s964_s3] sm:$0x3] }
 0x3e3   :  { %v413_v11 = vsub.f32 %v412_v9, %v390_v55  ;;  %435 = vmatpush.msra.mxu3 %v416_v10 }
 0x3e4   :  { %567 = vmatmul.msk.f32.vlgmr.msra.gmra.mxu3 %vm219_vm2, %v414_v42 }
 0x3e5   :  { %v462_v39 = vmul.f32 %v415_v7, %v413_v11 }
 0x3e7   :  { %478 = vmatpush.msrb.mxu3 %v462_v39 }
 0x3ec   :  { %569 = vmatmul.msk.f32.vlgmr.msrb.gmra.mxu3 %vm219_vm2, %v414_v42 }
 0x3f3   :  { %v407_v47 = vpop.permute.xlu0 %406 }
 0x3f4   :  { %v409_v12 = vsel %vm219_vm2, %v407_v47, 0.0 }
 0x3f5   :  { %410 = vadd.xlane.f32.xlu1 %v409_v12 }
 0x467   :  { %v437_v13 = vpop.f32.mrf.mxu3 }
 0x468   :  { %v411_v14 = vpop.xlane.xlu1 %410  ;;  %v517_v23 = vsel %vm485_vm3, %v437_v13, -inf }
 0x469   :  { %v440_v15 = vmul.f32 %v415_v7, %v411_v14 }
 0x46b   :  { %456 = vmatpush.msrb.mxu2 %v440_v15 }
 0x46c   :  { %568 = vmatmul.msk.f32.vlgmr.msrb.gmra.mxu2 %vm219_vm2, %v414_v42 }
 0x46f   :  { %v480_v19 = vpop.f32.mrf.mxu3 }
 0x470   :  { %v570_v20 = vadd.f32 -1.7917595, %v480_v19 }
 0x472   :  { %v484_v21 = vsub.f32 %v570_v20, %v461_v16 }
 0x474   :  { %v486_v22 = vsel %vm485_vm3, %v484_v21, -inf }
 0x475   :  { %487 = vmax.xlane.f32.xlu1 %v486_v22 }
 0x47d   :  { %518 = vmax.xlane.f32.xlu1 %v517_v23 }
 0x4e8   :  { %v488_v24 = vpop.xlane.xlu1 %487 }
 0x4e9   :  { %v489_v25 = vsub.f32 %v484_v21, %v488_v24 }
 0x4eb   :  { %v490_v26 = vmul.f32 1.442695, %v489_v25 }
 0x4ed   :  { %594 = vpow2.f32 %v490_v26 }
 0x4ef   :  { %v458_v27 = vpop.f32.mrf.mxu2 }
 0x4f0   :  { %v519_v28 = vpop.xlane.xlu1 %518  ;;  %v530_v29 = vsel %vm485_vm3, %v458_v27, 0.0 }
 0x4f1   :  { %v520_v30 = vsub.f32 %v437_v13, %v519_v28  ;;  %531 = vadd.xlane.f32.xlu1 %v530_v29 }
 0x4f3   :  { %v595_v31 = vpop.eup %594  ;;  %v521_v32 = vmul.f32 1.442695, %v520_v30 }
 0x4f4   :  { %v492_v33 = vsel %vm485_vm3, %v595_v31, 0.0 }
 0x4f5   :  { %596 = vpow2.f32 %v521_v32  ;;  %493 = vadd.xlane.f32.xlu0 %v492_v33 }
 0x4fb   :  { %v597_v34 = vpop.eup %596 }
 0x4fc   :  { %v523_v35 = vsel %vm485_vm3, %v597_v34, 0.0 }
 0x4fd   :  { %524 = vadd.xlane.f32.xlu2 %v523_v35 }
 0x564   :  { %v532_v4 = vpop.xlane.xlu1 %531 }
 0x568   :  { %v494_v36 = vpop.xlane.xlu0 %493 }
 0x569   :  { %598 = vlog2.f32 %v494_v36 }
 0x56f   :  { %v599_v37 = vpop.eup %598 }
 0x570   :  { %v496_v38 = vmul.f32 0.6931472, %v599_v37  ;;  %v525_v56 = vpop.xlane.xlu2 %524 }
 0x572   :  { %v497_v40 = vadd.f32 %v496_v38, %v488_v24 }
 0x574   :  { %v499_v41 = vsub.f32 %v484_v21, %v497_v40  ;;  %v571_v52 = vadd.f32 -1.3862944, %v497_v40 }
 0x576   :  { %v500_v43 = vmul.f32 1.442695, %v499_v41 }
 0x578   :  { %600 = vpow2.f32 %v500_v43 }
 0x57e   :  { %v601_v44 = vpop.eup %600 }
 0x57f   :  { %v502_v45 = vmax.f32 %v601_v44, 1e-10 }
 0x581   :  { %v503_v46 = vmin.f32 %v502_v45, 0.99999 }
 0x583   :  { %v504_v48 = vsub.f32 1.0, %v503_v46 }
 0x585   :  { %602 = vlog2.f32 %v504_v48 }
 0x586   :  { %604 = vrcp.f32 %v610_v18 }
 0x587   :  { %606 = vlog2.f32 %v525_v56 }
 0x58b   :  { %v603_v49 = vpop.eup %602 }
 0x58c   :  { %v506_v50 = vmul.f32 0.6931472, %v603_v49  ;;  %v605_v54 = vpop.eup %604 }
 0x58d   :  { %v534_v58 = vmul.f32 4.0, %v605_v54  ;;  %v607_v62 = vpop.eup %606  ;;  %vm538_vm4 = vweird.f32 %v605_v54 }
 0x58e   :  { %v507_v51 = vadd.f32 %v506_v50, %v497_v40  ;;  %v527_v0 = vmul.f32 0.6931472, %v607_v62 }
 0x58f   :  { %v535_v61 = vsub.f32 1.0, %v534_v58 }
 0x590   :  { %v572_v53 = vadd.f32 -1.0986123, %v507_v51  ;;  %v528_v2 = vadd.f32 %v527_v0, %v519_v28 }
 0x591   :  { %v536_v63 = vmul.f32 %v605_v54, %v535_v61 }
 0x592   :  { %v509_v55 = vsub.f32 %v571_v52, %v572_v53  ;;  %v529_v5 = vsub.f32 0.0, %v528_v2 }
 0x593   :  { %v537_v1 = vadd.f32 %v605_v54, %v536_v63 }
 0x594   :  { %v510_v57 = vsub.f32 %v509_v55, %v601_v44 }
 0x595   :  { %v539_v3 = vsel %vm538_vm4, %v605_v54, %v537_v1 }
 0x596   :  { %v511_v59 = vmul.f32 %v510_v57, %v461_v16  ;;  %v540_v6 = vmul.f32 %v539_v3, %v532_v4 }
 0x598   :  { %v512_v60 = vsel %vm485_vm3, %v511_v59, 0.0  ;;  %v541_v7 = vadd.f32 %v540_v6, %v529_v5 }
 0x599   :  { %513 = vadd.xlane.f32.xlu1 %v512_v60 }
 0x59a   :  { %v543_v8 = vadd.f32 %v542_v17, %v541_v7 }
 0x5b2   :  { %545 = vrot.lane.b32.xlu1 %v543_v8, %s611_s25 }
 0x60c   :  { %v514_v9 = vpop.xlane.xlu1 %513 }
 0x60d   :  { %v515_v10 = vadd.f32 %v571_v52, %v514_v9 }
 0x60f   :  { %v516_v42 = vsub.f32 0.0, %v515_v10 }
 0x611   :  { %v549_v11 = vsel %vm548_vm5, %v516_v42, %v529_v5 }
 0x612   :  { %v551_v39 = vsel %vm550_vm6, %v549_v11, %v540_v6 }
 0x624   :  { %v546_v47 = vpop.permute.xlu1 %545 }
 0x625   :  { %v553_v12 = vsel %vm552_vm7, %v551_v39, %v546_v47 }
 0x626   :  { %554 = vst.msk [vmem:[%s965_s19] sm:$0x3] %vm485_vm3, %v553_v12 }

</bundles_post_ra>
